<compile_context>
chip_gen: v6e
topology: v6e:2x2x1
jax: 0.10.0
libtpu: 0.0.40
codegen_flags: <defaults>
</compile_context>

<pallas_src>
import jax
import jax.numpy as jnp
from jax.experimental import pallas as pl
from jax.experimental.pallas import tpu as pltpu

H1 = 512
H2 = 256
LANE = 128

_HAS_BUFFERED = hasattr(pl, "Buffered")   # trace/import-time capability check


def _round_up(n, m):
    return (n + m - 1) // m * m


def _device_flags():
    try:
        kind = jax.devices()[0].device_kind.lower()
    except Exception:
        kind = ""
    is_v5 = "v5" in kind
    is_v7 = "v7" in kind
    return is_v5, is_v7


def _vmem_capacity_bytes():
    try:
        return int(pltpu.get_tpu_info().vmem_capacity_bytes)
    except Exception:
        return 64 * 2**20   # conservative (v7x per-TC size)


def _choose_tb(B, is_v7x):
    # Large tiles amortize per-step overhead and MXU weight loading; VMEM is not the
    # limiter for small/medium D (intermediates cost only tb*(H1+H2+2*Dp)*4 bytes).
    tb = 512
    if is_v7x and B >= 256:
        # Guarantee >= 2 "parallel" grid steps so both v7x TensorCores get work.
        tb = min(tb, _round_up(pl.cdiv(B, 2), 128))
    tb = min(tb, _round_up(B, 16))   # never tile wider than the (16-rounded) batch
    return max(16, tb)               # multiple of 16: full bf16 sublane packing


def prepare_params(w1, b1, w2, b2, w3, b3):
    """One-time cast/pad of the MLP parameters (hoisted out of the forward pass).

    Weights must be pre-transposed to (in, out); biases (1, out).
    Feature dim is padded to a multiple of 128 (lane width); padded logit columns
    get a -1e30 bias so exp() underflows to exactly 0 and softmax over the real
    columns is unchanged.
    """
    D = w1.shape[0]
    Dp = _round_up(max(D, LANE), LANE)
    bf16, f32 = jnp.bfloat16, jnp.float32
    w1p = jnp.pad(w1.astype(bf16), ((0, Dp - D), (0, 0)))
    w2p = w2.astype(bf16)
    w3p = jnp.pad(w3.astype(bf16), ((0, 0), (0, Dp - D)))
    b1p = b1.astype(f32)
    b2p = b2.astype(f32)
    b3p = jnp.pad(b3.astype(f32), ((0, 0), (0, Dp - D)), constant_values=-1e30)
    return (w1p, b1p, w2p, b2p, w3p, b3p)


def _make_kernel(use_bf16_exp):
    def kernel(x_ref, w1_ref, b1_ref, w2_ref, b2_ref, w3_ref, b3_ref, o_ref):
        # x arrives in native f32; cast to bf16 in-kernel (hides under MXU slack).
        x = x_ref[...].astype(jnp.bfloat16)

        # Layer 1: Linear(D, 512) + ReLU   (Dropout(0.2) == identity in eval mode)
        h1 = jnp.dot(x, w1_ref[...], preferred_element_type=jnp.float32) + b1_ref[...]
        h1 = jnp.maximum(h1, 0.0)

        # Layer 2: Linear(512, 256) + ReLU
        h2 = jnp.dot(h1.astype(jnp.bfloat16), w2_ref[...],
                     preferred_element_type=jnp.float32) + b2_ref[...]
        h2 = jnp.maximum(h2, 0.0)

        # Layer 3: Linear(256, D)
        logits = jnp.dot(h2.astype(jnp.bfloat16), w3_ref[...],
                         preferred_element_type=jnp.float32) + b3_ref[...]

        # softmax(logits + 1e-15) == softmax(logits): the constant shift cancels.
        # Padded columns carry a -1e30 bias -> exp underflows to exactly 0.
        m = jnp.max(logits, axis=-1, keepdims=True)
        z = logits - m
        if use_bf16_exp:                       # bf16 EUP (v6e/v7x): ~2x exp throughput
            e = jnp.exp(z.astype(jnp.bfloat16)).astype(jnp.float32)
        else:                                  # v5-class: no bf16 EUP
            e = jnp.exp(z)
        s = jnp.sum(e, axis=-1, keepdims=True)
        inv = 1.0 / s                          # exact per-row reciprocal (tb divides)
        o_ref[...] = (e * inv).astype(o_ref.dtype)

    return kernel


def distribution_mapper(x, prepared_params, *, tb=None):
    """Fused forward pass. x: (B, D) f32/bf16; prepared_params from prepare_params()."""
    w1p, b1p, w2p, b2p, w3p, b3p = prepared_params
    B, D = x.shape
    Dp = w1p.shape[0]
    out_dtype = x.dtype
    out_itemsize = jnp.dtype(out_dtype).itemsize
    x_itemsize = jnp.dtype(x.dtype).itemsize

    is_v5, is_v7 = _device_flags()

    # ---- tiling -----------------------------------------------------------
    if tb is None:
        tb = _choose_tb(B, is_v7)
    tb = max(16, min(_round_up(tb, 16), _round_up(B, 16)))
    Bp = _round_up(B, tb)
    grid = (Bp // tb,)

    # Pad x only when shapes require it (no dtype cast in the wrapper).
    if Bp != B or Dp != D:
        xp = jnp.pad(x, ((0, Bp - B), (0, Dp - D)))
    else:
        xp = x

    # ---- VMEM budget (generation-aware) ------------------------------------
    weight_bytes = (Dp * H1 + H1 * H2 + H2 * Dp) * 2 + (H1 + H2 + Dp) * 4
    weight_resident = weight_bytes if _HAS_BUFFERED else 2 * weight_bytes
    io_bytes = 2 * tb * Dp * (x_itemsize + out_itemsize)      # double-buffered tiles
    interm_bytes = tb * (H1 + H2 + 2 * Dp) * 4
    est = weight_resident + io_bytes + interm_bytes + (8 << 20)  # + compiler scratch headroom
    vmem_cap = _vmem_capacity_bytes()
    vmem_limit = int(min(int(0.9 * vmem_cap), max(16 << 20, est)))

    # ---- cost estimate (helps XLA schedule surrounding ops) ----------------
    cost = pl.CostEstimate(
        flops=2 * Bp * (Dp * H1 + H1 * H2 + H2 * Dp),
        transcendentals=Bp * Dp + Bp,
        bytes_accessed=Bp * Dp * (x_itemsize + out_itemsize) + weight_bytes,
    )

    # Grid-invariant weight/bias blocks: single-buffered when supported.
    if _HAS_BUFFERED:
        def const_spec(shape):
            return pl.BlockSpec(shape, lambda i: (0, 0), pipeline_mode=pl.Buffered(1))
    else:
        def const_spec(shape):
            return pl.BlockSpec(shape, lambda i: (0, 0))

    kernel = _make_kernel(use_bf16_exp=not is_v5)

    out = pl.pallas_call(
        kernel,
        out_shape=jax.ShapeDtypeStruct((Bp, Dp), out_dtype),
        grid_spec=pltpu.PrefetchScalarGridSpec(
            num_scalar_prefetch=0,
            grid=grid,
            in_specs=[
                pl.BlockSpec((tb, Dp), lambda i: (i, 0)),   # x tile over batch
                const_spec((Dp, H1)), const_spec((1, H1)),
                const_spec((H1, H2)), const_spec((1, H2)),
                const_spec((H2, Dp)), const_spec((1, Dp)),
            ],
            out_specs=pl.BlockSpec((tb, Dp), lambda i: (i, 0)),
        ),
        compiler_params=pltpu.CompilerParams(
            dimension_semantics=("parallel",),
            vmem_limit_bytes=vmem_limit,
        ),
        cost_estimate=cost,
    )(xp, w1p, b1p, w2p, b2p, w3p, b3p)

    return out[:B, :D]


def init_params(key, input_dim):
    """Deterministic synthetic init (PyTorch-like uniform(-1/sqrt(fan_in), +1/sqrt(fan_in)))."""
    ks = jax.random.split(key, 6)

    def lin(kw, kb, fan_in, fan_out):
        bound = 1.0 / jnp.sqrt(fan_in)
        # Stored already transposed: (in, out)
        w = jax.random.uniform(kw, (fan_in, fan_out), jnp.float32, -bound, bound)
        b = jax.random.uniform(kb, (1, fan_out), jnp.float32, -bound, bound)
        return w, b

    w1, b1 = lin(ks[0], ks[1], input_dim, H1)
    w2, b2 = lin(ks[2], ks[3], H1, H2)
    w3, b3 = lin(ks[4], ks[5], H2, input_dim)
    return w1, b1, w2, b2, w3, b3


def reference(x, w1, b1, w2, b2, w3, b3):
    h1 = jnp.maximum(x @ w1 + b1, 0.0)
    h2 = jnp.maximum(h1 @ w2 + b2, 0.0)
    logits = h2 @ w3 + b3
    return jax.nn.softmax(logits + 1e-15, axis=1)


if __name__ == "__main__":
    key = jax.random.PRNGKey(0)
    k_x, k_p = jax.random.split(key)

    batch, input_dim = 8, 32
    x = jax.random.normal(k_x, (batch, input_dim), jnp.float32)
    params = init_params(k_p, input_dim)

    prepared = prepare_params(*params)          # one-time cast/pad (hoisted from forward)
    out = jax.block_until_ready(distribution_mapper(x, prepared))

    ref = reference(x, *params)
    assert out.shape == (batch, input_dim)
    # bf16 matmul operands + bf16 exp -> slightly looser tolerances than pure f32.
    assert jnp.allclose(out, ref, atol=5e-3, rtol=5e-2), "mismatch vs reference"
    assert jnp.allclose(jnp.sum(out, axis=1), 1.0, atol=1e-3), "softmax rows must sum to 1"

    print("KERNEL_OK")
</pallas_src>

<mosaic_0001>
module attributes {stable_mosaic.version = 11 : i64} {
  func.func @kernel(%arg0: i32, %arg1: memref<16x128xf32, #tpu.memory_space<vmem>>, %arg2: memref<128x512xbf16, #tpu.memory_space<vmem>>, %arg3: memref<1x512xf32, #tpu.memory_space<vmem>>, %arg4: memref<512x256xbf16, #tpu.memory_space<vmem>>, %arg5: memref<1x256xf32, #tpu.memory_space<vmem>>, %arg6: memref<256x128xbf16, #tpu.memory_space<vmem>>, %arg7: memref<1x128xf32, #tpu.memory_space<vmem>>, %arg8: memref<16x128xf32, #tpu.memory_space<vmem>>) attributes {dimension_semantics = [#tpu.dimension_semantics<parallel>], iteration_bounds = array<i64: 1>, scalar_prefetch = 0 : i64, scratch_operands = 0 : i64, tpu.core_type = #tpu.core_type<tc>, window_params = [{transform_indices = @transform_0, window_bounds = array<i64: 16, 128>}, {pipeline_mode = #tpu.pipeline_mode<synchronous>, transform_indices = @transform_1, window_bounds = array<i64: 128, 512>}, {pipeline_mode = #tpu.pipeline_mode<synchronous>, transform_indices = @transform_2, window_bounds = array<i64: 1, 512>}, {pipeline_mode = #tpu.pipeline_mode<synchronous>, transform_indices = @transform_3, window_bounds = array<i64: 512, 256>}, {pipeline_mode = #tpu.pipeline_mode<synchronous>, transform_indices = @transform_4, window_bounds = array<i64: 1, 256>}, {pipeline_mode = #tpu.pipeline_mode<synchronous>, transform_indices = @transform_5, window_bounds = array<i64: 256, 128>}, {pipeline_mode = #tpu.pipeline_mode<synchronous>, transform_indices = @transform_6, window_bounds = array<i64: 1, 128>}, {transform_indices = @transform_7, window_bounds = array<i64: 16, 128>}]} {
    %c0 = arith.constant 0 : index
    %c0_0 = arith.constant 0 : index
    %0 = vector.load %arg1[%c0, %c0_0] : memref<16x128xf32, #tpu.memory_space<vmem>>, vector<16x128xf32>
    %1 = arith.truncf %0 : vector<16x128xf32> to vector<16x128xbf16>
    %c0_1 = arith.constant 0 : index
    %c0_2 = arith.constant 0 : index
    %2 = vector.load %arg2[%c0_1, %c0_2] : memref<128x512xbf16, #tpu.memory_space<vmem>>, vector<128x512xbf16>
    %cst = arith.constant dense<0.000000e+00> : vector<16x512xf32>
    %3 = tpu.matmul %1, %2, %cst {dimension_numbers = #tpu.dot_dimension_numbers<[1], [0], [0], [1], [0, 0, 1, 1], [], []>} : vector<16x128xbf16>, vector<128x512xbf16>, vector<16x512xf32> -> vector<16x512xf32>
    %c0_3 = arith.constant 0 : index
    %c0_4 = arith.constant 0 : index
    %4 = vector.load %arg3[%c0_3, %c0_4] : memref<1x512xf32, #tpu.memory_space<vmem>>, vector<1x512xf32>
    %5 = vector.broadcast %4 : vector<1x512xf32> to vector<16x512xf32>
    %6 = arith.addf %3, %5 : vector<16x512xf32>
    %cst_5 = arith.constant 0.000000e+00 : f32
    %7 = vector.broadcast %cst_5 : f32 to vector<16x512xf32>
    %8 = arith.maximumf %6, %7 : vector<16x512xf32>
    %9 = arith.truncf %8 : vector<16x512xf32> to vector<16x512xbf16>
    %c0_6 = arith.constant 0 : index
    %c0_7 = arith.constant 0 : index
    %10 = vector.load %arg4[%c0_6, %c0_7] : memref<512x256xbf16, #tpu.memory_space<vmem>>, vector<512x256xbf16>
    %cst_8 = arith.constant dense<0.000000e+00> : vector<16x256xf32>
    %11 = tpu.matmul %9, %10, %cst_8 {dimension_numbers = #tpu.dot_dimension_numbers<[1], [0], [0], [1], [0, 0, 1, 1], [], []>} : vector<16x512xbf16>, vector<512x256xbf16>, vector<16x256xf32> -> vector<16x256xf32>
    %c0_9 = arith.constant 0 : index
    %c0_10 = arith.constant 0 : index
    %12 = vector.load %arg5[%c0_9, %c0_10] : memref<1x256xf32, #tpu.memory_space<vmem>>, vector<1x256xf32>
    %13 = vector.broadcast %12 : vector<1x256xf32> to vector<16x256xf32>
    %14 = arith.addf %11, %13 : vector<16x256xf32>
    %cst_11 = arith.constant 0.000000e+00 : f32
    %15 = vector.broadcast %cst_11 : f32 to vector<16x256xf32>
    %16 = arith.maximumf %14, %15 : vector<16x256xf32>
    %17 = arith.truncf %16 : vector<16x256xf32> to vector<16x256xbf16>
    %c0_12 = arith.constant 0 : index
    %c0_13 = arith.constant 0 : index
    %18 = vector.load %arg6[%c0_12, %c0_13] : memref<256x128xbf16, #tpu.memory_space<vmem>>, vector<256x128xbf16>
    %cst_14 = arith.constant dense<0.000000e+00> : vector<16x128xf32>
    %19 = tpu.matmul %17, %18, %cst_14 {dimension_numbers = #tpu.dot_dimension_numbers<[1], [0], [0], [1], [0, 0, 1, 1], [], []>} : vector<16x256xbf16>, vector<256x128xbf16>, vector<16x128xf32> -> vector<16x128xf32>
    %c0_15 = arith.constant 0 : index
    %c0_16 = arith.constant 0 : index
    %20 = vector.load %arg7[%c0_15, %c0_16] : memref<1x128xf32, #tpu.memory_space<vmem>>, vector<1x128xf32>
    %21 = vector.broadcast %20 : vector<1x128xf32> to vector<16x128xf32>
    %22 = arith.addf %19, %21 : vector<16x128xf32>
    %cst_17 = arith.constant dense<0xFF800000> : vector<16xf32>
    %23 = vector.multi_reduction <maximumf>, %22, %cst_17 [1] : vector<16x128xf32> to vector<16xf32>
    %24 = vector.shape_cast %23 : vector<16xf32> to vector<16x1xf32>
    %25 = vector.broadcast %24 : vector<16x1xf32> to vector<16x128xf32>
    %26 = arith.subf %22, %25 : vector<16x128xf32>
    %27 = arith.truncf %26 : vector<16x128xf32> to vector<16x128xbf16>
    %28 = math.exp %27 : vector<16x128xbf16>
    %29 = arith.extf %28 : vector<16x128xbf16> to vector<16x128xf32>
    %cst_18 = arith.constant dense<0.000000e+00> : vector<16xf32>
    %30 = vector.multi_reduction <add>, %29, %cst_18 [1] : vector<16x128xf32> to vector<16xf32>
    %31 = vector.shape_cast %30 : vector<16xf32> to vector<16x1xf32>
    %cst_19 = arith.constant 1.000000e+00 : f32
    %32 = vector.broadcast %cst_19 : f32 to vector<16x1xf32>
    %33 = arith.divf %32, %31 : vector<16x1xf32>
    %34 = vector.broadcast %33 : vector<16x1xf32> to vector<16x128xf32>
    %35 = arith.mulf %29, %34 : vector<16x128xf32>
    %c0_20 = arith.constant 0 : index
    %c0_21 = arith.constant 0 : index
    %36 = vector.load %arg8[%c0_20, %c0_21] : memref<16x128xf32, #tpu.memory_space<vmem>>, vector<16x128xf32>
    tpu.vector_store %arg8[%c0_20, %c0_21], %35 {strides = array<i32>} : memref<16x128xf32, #tpu.memory_space<vmem>>, vector<16x128xf32>,
    return
  }
  func.func @transform_0(%arg0: i32) -> (i32, i32) {
    %c0_i32 = arith.constant 0 : i32
    %c0_i32_0 = arith.constant 0 : i32
    return %arg0, %c0_i32 : i32, i32
  }
  func.func @transform_1(%arg0: i32) -> (i32, i32) {
    %c0_i32 = arith.constant 0 : i32
    %c0_i32_0 = arith.constant 0 : i32
    %c0_i32_1 = arith.constant 0 : i32
    return %c0_i32, %c0_i32_0 : i32, i32
  }
  func.func @transform_2(%arg0: i32) -> (i32, i32) {
    %c0_i32 = arith.constant 0 : i32
    %c0_i32_0 = arith.constant 0 : i32
    %c0_i32_1 = arith.constant 0 : i32
    return %c0_i32, %c0_i32_0 : i32, i32
  }
  func.func @transform_3(%arg0: i32) -> (i32, i32) {
    %c0_i32 = arith.constant 0 : i32
    %c0_i32_0 = arith.constant 0 : i32
    %c0_i32_1 = arith.constant 0 : i32
    return %c0_i32, %c0_i32_0 : i32, i32
  }
  func.func @transform_4(%arg0: i32) -> (i32, i32) {
    %c0_i32 = arith.constant 0 : i32
    %c0_i32_0 = arith.constant 0 : i32
    %c0_i32_1 = arith.constant 0 : i32
    return %c0_i32, %c0_i32_0 : i32, i32
  }
  func.func @transform_5(%arg0: i32) -> (i32, i32) {
    %c0_i32 = arith.constant 0 : i32
    %c0_i32_0 = arith.constant 0 : i32
    %c0_i32_1 = arith.constant 0 : i32
    return %c0_i32, %c0_i32_0 : i32, i32
  }
  func.func @transform_6(%arg0: i32) -> (i32, i32) {
    %c0_i32 = arith.constant 0 : i32
    %c0_i32_0 = arith.constant 0 : i32
    %c0_i32_1 = arith.constant 0 : i32
    return %c0_i32, %c0_i32_0 : i32, i32
  }
  func.func @transform_7(%arg0: i32) -> (i32, i32) {
    %c0_i32 = arith.constant 0 : i32
    %c0_i32_0 = arith.constant 0 : i32
    return %arg0, %c0_i32 : i32, i32
  }
}

</mosaic_0001>

<bundles_post_ra>
// kernel: tpu_custom_call.1
= control target key start
LH: loop header
LB: loop body
LE: loop exit
PB: predicated region body
PF: predicated region fallthrough
CT: control target
= control target key end

     0   :  { %12 = vsyncpa [#allocation3], 0  ;;  %s1658_s0 = inlined_call_operand.hbm [shape: f32[16,128], index: 0, kind: input, shape index: {}]   ;;  %s1659_s1 = inlined_call_operand.hbm [shape: bf16[128,512], index: 1, kind: input, shape index: {}]   ;;  %s1660_s2 = inlined_call_operand.hbm [shape: f32[1,512], index: 2, kind: input, shape index: {}]   ;;  %s1661_s3 = inlined_call_operand.hbm [shape: bf16[512,256], index: 3, kind: input, shape index: {}]   ;;  %s1662_s4 = inlined_call_operand.vmem [shape: f32[1,256], index: 4, kind: input, shape index: {}]   ;;  %s1663_s5 = inlined_call_operand.hbm [shape: bf16[256,128], index: 5, kind: input, shape index: {}]   ;;  %s1664_s6 = inlined_call_operand.vmem [shape: f32[1,128], index: 6, kind: input, shape index: {}]   ;;  %s1665_s7 = inlined_call_operand.hbm [shape: f32[16,128], index: 7, kind: output, shape index: {}]  }
   0x1   :  { %13 = vsyncpa [#allocation6], 0 }
   0x2   :  { %14 = vsyncpa [#allocation9], 0 }
   0x3   :  { %15 = vsyncpa [#allocation4], 0  ;;  %s1558_s24 = smov [#allocation5]  }
   0x4   :  { %s33_s25 = sshll.u32 %s1558_s24, 4  ;;  %s34_s25 = int_to_ptr.vmem [resolvable:$true] %s33_s25 }
   0x5   :  { %s1438_s26 = scalar_lea.vmem %s34_s25, 4096  ;;  %p1443_p1 = scmp.lt.s32.totalorder %s34_s25, %s34_s25 }
   0x6   :  { %p1439_p0 = scmp.ne.s32.totalorder %s34_s25, %s1438_s26  ;;  %p1444_p2 = scmp.lt.s32.totalorder %s1438_s26, %s1438_s26 }
   0x8   :  { %p1445_p3 = por %p1444_p2, %p1443_p1 }
   0xa   :  { %p1446_p4 = pnand %p1445_p3, %p1439_p0 }
   0xc   :  { %1449 = shalt.err (!%p1446_p4)
}
   0xd   :  { %s1559_s27 = smov 256   ;;  %s1560_s28 = smov 16  }
   0xe   :  { %39 = dma.hbm_to_vmem [thread:$0]  %s1659_s1, 4096, %s34_s25, [#allocation6], %s1559_s27, %s1559_s27, %s1560_s28  }
   0xf   :  { %s1561_s8 = smov [#allocation8]   ;;  %s1562_s10 = smov [#allocation2]  }
  0x10   :  { %s55_s9 = sshll.u32 %s1561_s8, 4  ;;  %s21_s11 = sshll.u32 %s1562_s10, 4  ;;  %s56_s9 = int_to_ptr.vmem [resolvable:$true] %s55_s9  ;;  %s22_s11 = int_to_ptr.vmem [resolvable:$true] %s21_s11 }
  0x11   :  { %s1458_s12 = scalar_lea.vmem %s56_s9, 8192  ;;  %p1463_p6 = scmp.lt.s32.totalorder %s56_s9, %s56_s9 }
  0x12   :  { %p1459_p5 = scmp.ne.s32.totalorder %s56_s9, %s1458_s12  ;;  %p1464_p7 = scmp.lt.s32.totalorder %s1458_s12, %s1458_s12 }
  0x14   :  { %p1465_p8 = por %p1464_p7, %p1463_p6 }
  0x16   :  { %p1466_p9 = pnand %p1465_p8, %p1459_p5 }
  0x18   :  { %1469 = shalt.err (!%p1466_p9)
}
  0x19   :  { %s1563_s13 = smov 128   ;;  %s1564_s14 = smov 8  }
  0x1a   :  { %61 = dma.hbm_to_vmem [thread:$0]  %s1661_s3, 8192, %s56_s9, [#allocation9], %s1563_s13, %s1563_s13, %s1564_s14  }
  0x1b   :  { %s1478_s1 = scalar_lea.vmem %s22_s11, 256  ;;  %p1483_p11 = scmp.lt.s32.totalorder %s22_s11, %s22_s11 }
  0x1c   :  { %p1479_p10 = scmp.ne.s32.totalorder %s22_s11, %s1478_s1  ;;  %p1484_p12 = scmp.lt.s32.totalorder %s1478_s1, %s1478_s1 }
  0x1e   :  { %p1485_p13 = por %p1484_p12, %p1483_p11 }
  0x20   :  { %p1486_p0 = pnand %p1485_p13, %p1479_p10 }
  0x22   :  { %1489 = shalt.err (!%p1486_p0)
}
  0x23   :  { %27 = dma.hbm_to_vmem [thread:$0]  %s1658_s0, 256, %s22_s11, [#allocation3], %s1563_s13, %s1563_s13, %s1564_s14  }
  0x24   :  { %s1565_s19 = smov [#allocation7]   ;;  %s1566_s21 = smov [#allocation10]  }
  0x25   :  { %s46_s20 = sshll.u32 %s1565_s19, 4  ;;  %s69_s3 = sshll.u32 %s1566_s21, 4  ;;  %s47_s20 = int_to_ptr.vmem [resolvable:$true] %s46_s20  ;;  %s70_s3 = int_to_ptr.vmem [resolvable:$true] %s69_s3 }
  0x26   :  { %s1498_s22 = scalar_lea.vmem %s47_s20, 64  ;;  %p1503_p2 = scmp.lt.s32.totalorder %s47_s20, %s47_s20 }
  0x27   :  { %p1499_p1 = scmp.ne.s32.totalorder %s47_s20, %s1498_s22  ;;  %p1504_p3 = scmp.lt.s32.totalorder %s1498_s22, %s1498_s22 }
  0x29   :  { %p1505_p4 = por %p1504_p3, %p1503_p2 }
  0x2b   :  { %p1506_p5 = pnand %p1505_p4, %p1499_p1 }
  0x2d   :  { %1509 = shalt.err (!%p1506_p5)
}
  0x2e   :  { %49 = dma.hbm_to_vmem [thread:$0]  %s1660_s2, 64, %s47_s20, [#allocation6]  }
  0x2f   :  { %s1518_s25 = scalar_lea.vmem %s70_s3, 2048  ;;  %p1523_p7 = scmp.lt.s32.totalorder %s70_s3, %s70_s3 }
  0x30   :  { %p1519_p6 = scmp.ne.s32.totalorder %s70_s3, %s1518_s25  ;;  %p1524_p8 = scmp.lt.s32.totalorder %s1518_s25, %s1518_s25 }
  0x32   :  { %p1525_p9 = por %p1524_p8, %p1523_p7 }
  0x34   :  { %p1526_p10 = pnand %p1525_p9, %p1519_p6 }
  0x36   :  { %1529 = shalt.err (!%p1526_p10)
}
  0x37   :  { %s1567_s0 = smov 64   ;;  %s1568_s26 = smov 4  }
  0x38   :  { %75 = dma.hbm_to_vmem [thread:$0]  %s1663_s5, 2048, %s70_s3, [#allocation9], %s1567_s0, %s1567_s0, %s1568_s26  }
  0x39   :  { %1550 = dma.done.wait [#allocation3], 256  }
  0x3a   :  { %1551 = vsyncadd [#allocation3], 4294967040 }
  0x3b   :  { %1552 = dma.done.wait [#allocation6], 4160  }
  0x3c   :  { %1553 = vsyncadd [#allocation6], 4294963136 }
  0x3d   :  { %1554 = dma.done.wait [#allocation9], 10240  }
  0x3e   :  { %1555 = vsyncadd [#allocation9], 4294957056  ;;  %v1569_v0 = vmov 0   ;;  %v1264_v1 = vld [vmem:[#allocation5 + $0xe4] ss:$16 sps:$4 sm:$0xff]   ;;  %v95_v34 = vld [vmem:[#allocation2 + $0x8] sm:$0xff] }
  0x3f   :  { %343 = vmatprep.mubr.bf16.mxu0 %v1569_v0  ;;  %386 = vmatprep.mubr.bf16.mxu1 %v1569_v0  ;;  %v1266_v2 = vld [vmem:[#allocation5 + $0xec] ss:$16 sps:$4 sm:$0xff]   ;;  %v1268_v3 = vld [vmem:[#allocation5 + $0xe0] ss:$16 sps:$4 sm:$0xff]   ;;  %v1269_v4 = vld [vmem:[#allocation5 + $0xe8] ss:$16 sps:$4 sm:$0xff]  }
  0x40   :  { %311 = vmatprep.subr.bf16.mxu0 %v1264_v1  ;;  %354 = vmatprep.subr.bf16.mxu1 %v1266_v2  ;;  %v1270_v5 = vld [vmem:[#allocation5 + $0xc4] ss:$16 sps:$4 sm:$0xff]   ;;  %v1272_v6 = vld [vmem:[#allocation5 + $0xcc] ss:$16 sps:$4 sm:$0xff]   ;;  %v1274_v7 = vld [vmem:[#allocation5 + $0xc0] ss:$16 sps:$4 sm:$0xff]  }
  0x41   :  { %312 = vmatpush1.bf16.msra.mxu0 %v1268_v3  ;;  %355 = vmatpush1.bf16.msra.mxu1 %v1269_v4  ;;  %v1275_v8 = vld [vmem:[#allocation5 + $0xc8] ss:$16 sps:$4 sm:$0xff]   ;;  %v1276_v9 = vld [vmem:[#allocation5 + $0xa4] ss:$16 sps:$4 sm:$0xff]   ;;  %v1278_v10 = vld [vmem:[#allocation5 + $0xac] ss:$16 sps:$4 sm:$0xff]  }
  0x42   :  { %313 = vmatprep.subr.bf16.mxu0 %v1270_v5  ;;  %356 = vmatprep.subr.bf16.mxu1 %v1272_v6  ;;  %v1280_v11 = vld [vmem:[#allocation5 + $0xa0] ss:$16 sps:$4 sm:$0xff]   ;;  %v1281_v12 = vld [vmem:[#allocation5 + $0xa8] ss:$16 sps:$4 sm:$0xff]   ;;  %v1282_v13 = vld [vmem:[#allocation5 + $0x84] ss:$16 sps:$4 sm:$0xff]  }
  0x43   :  { %v1284_v14 = vld [vmem:[#allocation5 + $0x8c] ss:$16 sps:$4 sm:$0xff]   ;;  %v1286_v15 = vld [vmem:[#allocation5 + $0x80] ss:$16 sps:$4 sm:$0xff]   ;;  %v1287_v16 = vld [vmem:[#allocation5 + $0x88] ss:$16 sps:$4 sm:$0xff]  }
  0x44   :  { %v1288_v17 = vld [vmem:[#allocation5 + $0x64] ss:$16 sps:$4 sm:$0xff]   ;;  %v1290_v18 = vld [vmem:[#allocation5 + $0x6c] ss:$16 sps:$4 sm:$0xff]   ;;  %v1292_v19 = vld [vmem:[#allocation5 + $0x60] ss:$16 sps:$4 sm:$0xff]  }
  0x45   :  { %314 = vmatpush1.bf16.msra.mxu0 %v1274_v7  ;;  %357 = vmatpush1.bf16.msra.mxu1 %v1275_v8  ;;  %v1293_v20 = vld [vmem:[#allocation5 + $0x68] ss:$16 sps:$4 sm:$0xff]   ;;  %v1294_v21 = vld [vmem:[#allocation5 + $0x44] ss:$16 sps:$4 sm:$0xff]   ;;  %v1296_v22 = vld [vmem:[#allocation5 + $0x4c] ss:$16 sps:$4 sm:$0xff]  }
  0x46   :  { %315 = vmatprep.subr.bf16.mxu0 %v1276_v9  ;;  %358 = vmatprep.subr.bf16.mxu1 %v1278_v10  ;;  %v1298_v23 = vld [vmem:[#allocation5 + $0x40] ss:$16 sps:$4 sm:$0xff]   ;;  %v1299_v24 = vld [vmem:[#allocation5 + $0x48] ss:$16 sps:$4 sm:$0xff]   ;;  %v1300_v25 = vld [vmem:[#allocation5 + $0x24] ss:$16 sps:$4 sm:$0xff]  }
  0x47   :  { %v1302_v26 = vld [vmem:[#allocation5 + $0x2c] ss:$16 sps:$4 sm:$0xff]   ;;  %v1304_v27 = vld [vmem:[#allocation5 + $0x20] ss:$16 sps:$4 sm:$0xff]   ;;  %v1305_v28 = vld [vmem:[#allocation5 + $0x28] ss:$16 sps:$4 sm:$0xff]  }
  0x48   :  { %v1306_v29 = vld [vmem:[#allocation5 + $0x4] ss:$16 sps:$4 sm:$0xff]   ;;  %v1308_v30 = vld [vmem:[#allocation5 + $0xc] ss:$16 sps:$4 sm:$0xff]   ;;  %v1310_v31 = vld [vmem:[#allocation5] ss:$16 sps:$4 sm:$0xff]  }
  0x49   :  { %316 = vmatpush1.bf16.msra.mxu0 %v1280_v11  ;;  %359 = vmatpush1.bf16.msra.mxu1 %v1281_v12  ;;  %v1311_v32 = vld [vmem:[#allocation5 + $0x8] ss:$16 sps:$4 sm:$0xff]   ;;  %v94_v33 = vld [vmem:[#allocation2] sm:$0xff]  ;;  %v1318_v42 = vld [vmem:[#allocation8 + $0x60] ss:$8 sps:$4 sm:$0xff]  }
  0x4a   :  { %317 = vmatprep.subr.bf16.mxu0 %v1282_v13  ;;  %360 = vmatprep.subr.bf16.mxu1 %v1284_v14  ;;  %v1314_v35 = vld [vmem:[#allocation8 + $0x74] ss:$8 sps:$4 sm:$0xff]   ;;  %v96_v37 = vpack.c.bf16 %v95_v34, %v94_v33  ;;  %v1312_v38 = vld [vmem:[#allocation8 + $0x70] ss:$8 sps:$4 sm:$0xff]   ;;  %v1320_v40 = vld [vmem:[#allocation8 + $0x64] ss:$8 sps:$4 sm:$0xff]  }
  0x4b   :  { %v1317_v36 = vld [vmem:[#allocation8 + $0x174] ss:$8 sps:$4 sm:$0xff]   ;;  %v1315_v39 = vld [vmem:[#allocation8 + $0x170] ss:$8 sps:$4 sm:$0xff]   ;;  %v1323_v41 = vld [vmem:[#allocation8 + $0x164] ss:$8 sps:$4 sm:$0xff]  }
  0x4c   :  { %v1321_v43 = vld [vmem:[#allocation8 + $0x160] ss:$8 sps:$4 sm:$0xff]   ;;  %v1326_v44 = vld [vmem:[#allocation8 + $0x54] ss:$8 sps:$4 sm:$0xff]   ;;  %v1324_v46 = vld [vmem:[#allocation8 + $0x50] ss:$8 sps:$4 sm:$0xff]  }
  0x4d   :  { %318 = vmatpush1.bf16.msra.mxu0 %v1286_v15  ;;  %361 = vmatpush1.bf16.msra.mxu1 %v1287_v16  ;;  %v1329_v45 = vld [vmem:[#allocation8 + $0x154] ss:$8 sps:$4 sm:$0xff]   ;;  %v1327_v47 = vld [vmem:[#allocation8 + $0x150] ss:$8 sps:$4 sm:$0xff]   ;;  %v1332_v48 = vld [vmem:[#allocation8 + $0x44] ss:$8 sps:$4 sm:$0xff]  }
  0x4e   :  { %319 = vmatprep.subr.bf16.mxu0 %v1288_v17  ;;  %362 = vmatprep.subr.bf16.mxu1 %v1290_v18  ;;  %v1335_v49 = vld [vmem:[#allocation8 + $0x144] ss:$8 sps:$4 sm:$0xff]   ;;  %v1330_v50 = vld [vmem:[#allocation8 + $0x40] ss:$8 sps:$4 sm:$0xff]   ;;  %v1338_v52 = vld [vmem:[#allocation8 + $0x34] ss:$8 sps:$4 sm:$0xff]  }
  0x4f   :  { %v1333_v51 = vld [vmem:[#allocation8 + $0x140] ss:$8 sps:$4 sm:$0xff]   ;;  %v1341_v53 = vld [vmem:[#allocation8 + $0x134] ss:$8 sps:$4 sm:$0xff]   ;;  %v1336_v54 = vld [vmem:[#allocation8 + $0x30] ss:$8 sps:$4 sm:$0xff]  }
  0x50   :  { %v1339_v55 = vld [vmem:[#allocation8 + $0x130] ss:$8 sps:$4 sm:$0xff]   ;;  %v1344_v56 = vld [vmem:[#allocation8 + $0x24] ss:$8 sps:$4 sm:$0xff]   ;;  %v1342_v58 = vld [vmem:[#allocation8 + $0x20] ss:$8 sps:$4 sm:$0xff]  }
  0x51   :  { %320 = vmatpush1.bf16.msra.mxu0 %v1292_v19  ;;  %363 = vmatpush1.bf16.msra.mxu1 %v1293_v20  ;;  %v1347_v57 = vld [vmem:[#allocation8 + $0x124] ss:$8 sps:$4 sm:$0xff]   ;;  %v1345_v59 = vld [vmem:[#allocation8 + $0x120] ss:$8 sps:$4 sm:$0xff]   ;;  %v1350_v60 = vld [vmem:[#allocation8 + $0x14] ss:$8 sps:$4 sm:$0xff]  }
  0x52   :  { %321 = vmatprep.subr.bf16.mxu0 %v1294_v21  ;;  %364 = vmatprep.subr.bf16.mxu1 %v1296_v22  ;;  %v1353_v61 = vld [vmem:[#allocation8 + $0x114] ss:$8 sps:$4 sm:$0xff]   ;;  %v1348_v62 = vld [vmem:[#allocation8 + $0x10] ss:$8 sps:$4 sm:$0xff]   ;;  %v1356_v0 = vld [vmem:[#allocation8 + $0x4] ss:$8 sps:$4 sm:$0xff]  }
  0x53   :  { %v1351_v63 = vld [vmem:[#allocation8 + $0x110] ss:$8 sps:$4 sm:$0xff]   ;;  %v1359_v1 = vld [vmem:[#allocation8 + $0x104] ss:$8 sps:$4 sm:$0xff]   ;;  %v1354_v2 = vld [vmem:[#allocation8] ss:$8 sps:$4 sm:$0xff]  }
  0x54   :  { %v1357_v3 = vld [vmem:[#allocation8 + $0x100] ss:$8 sps:$4 sm:$0xff]   ;;  %v1362_v4 = vld [vmem:[#allocation8 + $0xf4] ss:$8 sps:$4 sm:$0xff]   ;;  %v1360_v6 = vld [vmem:[#allocation8 + $0xf0] ss:$8 sps:$4 sm:$0xff]  }
  0x55   :  { %322 = vmatpush1.bf16.msra.mxu0 %v1298_v23  ;;  %365 = vmatpush1.bf16.msra.mxu1 %v1299_v24  ;;  %v1365_v5 = vld [vmem:[#allocation8 + $0x1f4] ss:$8 sps:$4 sm:$0xff]   ;;  %v1363_v7 = vld [vmem:[#allocation8 + $0x1f0] ss:$8 sps:$4 sm:$0xff]   ;;  %v1368_v8 = vld [vmem:[#allocation8 + $0xe4] ss:$8 sps:$4 sm:$0xff]  }
  0x56   :  { %323 = vmatprep.subr.bf16.mxu0 %v1300_v25  ;;  %366 = vmatprep.subr.bf16.mxu1 %v1302_v26  ;;  %v1371_v9 = vld [vmem:[#allocation8 + $0x1e4] ss:$8 sps:$4 sm:$0xff]   ;;  %v1366_v10 = vld [vmem:[#allocation8 + $0xe0] ss:$8 sps:$4 sm:$0xff]   ;;  %v1374_v12 = vld [vmem:[#allocation8 + $0xd4] ss:$8 sps:$4 sm:$0xff]  }
  0x57   :  { %v1369_v11 = vld [vmem:[#allocation8 + $0x1e0] ss:$8 sps:$4 sm:$0xff]   ;;  %v1377_v13 = vld [vmem:[#allocation8 + $0x1d4] ss:$8 sps:$4 sm:$0xff]   ;;  %v1372_v14 = vld [vmem:[#allocation8 + $0xd0] ss:$8 sps:$4 sm:$0xff]  }
  0x58   :  { %v1375_v15 = vld [vmem:[#allocation8 + $0x1d0] ss:$8 sps:$4 sm:$0xff]   ;;  %v1380_v16 = vld [vmem:[#allocation8 + $0xc4] ss:$8 sps:$4 sm:$0xff]   ;;  %v1378_v18 = vld [vmem:[#allocation8 + $0xc0] ss:$8 sps:$4 sm:$0xff]  }
  0x59   :  { %324 = vmatpush1.bf16.msra.mxu0 %v1304_v27  ;;  %367 = vmatpush1.bf16.msra.mxu1 %v1305_v28  ;;  %v1383_v17 = vld [vmem:[#allocation8 + $0x1c4] ss:$8 sps:$4 sm:$0xff]   ;;  %v1381_v19 = vld [vmem:[#allocation8 + $0x1c0] ss:$8 sps:$4 sm:$0xff]   ;;  %v1386_v20 = vld [vmem:[#allocation8 + $0xb4] ss:$8 sps:$4 sm:$0xff]  }
  0x5a   :  { %325 = vmatprep.subr.bf16.mxu0 %v1306_v29  ;;  %368 = vmatprep.subr.bf16.mxu1 %v1308_v30  ;;  %v1389_v21 = vld [vmem:[#allocation8 + $0x1b4] ss:$8 sps:$4 sm:$0xff]   ;;  %v1384_v22 = vld [vmem:[#allocation8 + $0xb0] ss:$8 sps:$4 sm:$0xff]   ;;  %v1392_v24 = vld [vmem:[#allocation8 + $0xa4] ss:$8 sps:$4 sm:$0xff]  }
  0x5b   :  { %v1387_v23 = vld [vmem:[#allocation8 + $0x1b0] ss:$8 sps:$4 sm:$0xff]   ;;  %v1395_v25 = vld [vmem:[#allocation8 + $0x1a4] ss:$8 sps:$4 sm:$0xff]   ;;  %v1390_v26 = vld [vmem:[#allocation8 + $0xa0] ss:$8 sps:$4 sm:$0xff]  }
  0x5c   :  { %v1393_v27 = vld [vmem:[#allocation8 + $0x1a0] ss:$8 sps:$4 sm:$0xff]   ;;  %v1398_v28 = vld [vmem:[#allocation8 + $0x94] ss:$8 sps:$4 sm:$0xff]   ;;  %v1396_v30 = vld [vmem:[#allocation8 + $0x90] ss:$8 sps:$4 sm:$0xff]  }
  0x5d   :  { %326 = vmatpush1.bf16.msra.mxu0 %v1310_v31  ;;  %369 = vmatpush1.bf16.msra.mxu1 %v1311_v32  ;;  %v1401_v29 = vld [vmem:[#allocation8 + $0x194] ss:$8 sps:$4 sm:$0xff]   ;;  %v1399_v31 = vld [vmem:[#allocation8 + $0x190] ss:$8 sps:$4 sm:$0xff]   ;;  %v1404_v32 = vld [vmem:[#allocation8 + $0x84] ss:$8 sps:$4 sm:$0xff]  }
  0x5e   :  { %805 = vmatprep.subr.bf16.mxu0 %v1314_v35  ;;  %848 = vmatprep.subr.bf16.mxu1 %v1317_v36  ;;  %v1407_v33 = vld [vmem:[#allocation8 + $0x184] ss:$8 sps:$4 sm:$0xff]   ;;  %v1402_v34 = vld [vmem:[#allocation8 + $0x80] ss:$8 sps:$4 sm:$0xff]   ;;  %v1408_v36 = vld [vmem:[#allocation10 + $0x78] sm:$0xff]  }
  0x5f   :  { %v1405_v35 = vld [vmem:[#allocation8 + $0x180] ss:$8 sps:$4 sm:$0xff]  }
  0x60   :  { %344 = vmatmul.mubr.bf16.vlgmr.msra.gmra.mxu0 %v96_v37  ;;  %387 = vmatmul.mubr.bf16.vlgmr.msra.gmra.mxu1 %v96_v37  ;;  %v131_v37 = vlaneseq }
  0x61   :  { %806 = vmatpush1.bf16.msra.mxu0 %v1312_v38  ;;  %849 = vmatpush1.bf16.msra.mxu1 %v1315_v39 }
  0x62   :  { %807 = vmatprep.subr.bf16.mxu0 %v1320_v40  ;;  %850 = vmatprep.subr.bf16.mxu1 %v1323_v41  ;;  %v1632_v38 = vshrl.u32 %v131_v37, 7 }
  0x64   :  { %v137_v39 = vsub.s32 1, %v1632_v38  ;;  %v145_v40 = vsub.s32 3, %v1632_v38  ;;  %v133_v41 = vsub.s32 0, %v1632_v38 }
  0x65   :  { %808 = vmatpush1.bf16.msra.mxu0 %v1318_v42  ;;  %851 = vmatpush1.bf16.msra.mxu1 %v1321_v43  ;;  %v141_v42 = vsub.s32 2, %v1632_v38  ;;  %v129_v43 = vld [vmem:[#allocation7] sm:$0xf] }
  0x66   :  { %809 = vmatprep.subr.bf16.mxu0 %v1326_v44  ;;  %852 = vmatprep.subr.bf16.mxu1 %v1329_v45 }
  0x69   :  { %810 = vmatpush1.bf16.msra.mxu0 %v1324_v46  ;;  %853 = vmatpush1.bf16.msra.mxu1 %v1327_v47  ;;  %v138_v46 = vrot.slane %v129_v43, %v137_v39  ;;  %v146_v47 = vrot.slane %v129_v43, %v145_v40 }
  0x6a   :  { %811 = vmatprep.subr.bf16.mxu0 %v1332_v48  ;;  %854 = vmatprep.subr.bf16.mxu1 %v1335_v49  ;;  %v134_v48 = vrot.slane %v129_v43, %v133_v41  ;;  %v142_v49 = vrot.slane %v129_v43, %v141_v42 }
  0x6d   :  { %812 = vmatpush1.bf16.msra.mxu0 %v1330_v50  ;;  %855 = vmatpush1.bf16.msra.mxu1 %v1333_v51 }
  0x6e   :  { %813 = vmatprep.subr.bf16.mxu0 %v1338_v52  ;;  %856 = vmatprep.subr.bf16.mxu1 %v1341_v53 }
  0x71   :  { %814 = vmatpush1.bf16.msra.mxu0 %v1336_v54  ;;  %857 = vmatpush1.bf16.msra.mxu1 %v1339_v55 }
  0x72   :  { %815 = vmatprep.subr.bf16.mxu0 %v1344_v56  ;;  %858 = vmatprep.subr.bf16.mxu1 %v1347_v57 }
  0x75   :  { %816 = vmatpush1.bf16.msra.mxu0 %v1342_v58  ;;  %859 = vmatpush1.bf16.msra.mxu1 %v1345_v59 }
  0x76   :  { %817 = vmatprep.subr.bf16.mxu0 %v1350_v60  ;;  %860 = vmatprep.subr.bf16.mxu1 %v1353_v61 }
  0x79   :  { %818 = vmatpush1.bf16.msra.mxu0 %v1348_v62  ;;  %861 = vmatpush1.bf16.msra.mxu1 %v1351_v63 }
  0x7a   :  { %819 = vmatprep.subr.bf16.mxu0 %v1356_v0  ;;  %862 = vmatprep.subr.bf16.mxu1 %v1359_v1 }
  0x7d   :  { %820 = vmatpush1.bf16.msra.mxu0 %v1354_v2  ;;  %863 = vmatpush1.bf16.msra.mxu1 %v1357_v3 }
  0x7e   :  { %821 = vmatprep.subr.bf16.mxu0 %v1362_v4  ;;  %864 = vmatprep.subr.bf16.mxu1 %v1365_v5 }
  0x81   :  { %822 = vmatpush2.bf16.msra.mxu0 %v1360_v6  ;;  %865 = vmatpush2.bf16.msra.mxu1 %v1363_v7 }
  0x82   :  { %823 = vmatprep.subr.bf16.mxu0 %v1368_v8  ;;  %866 = vmatprep.subr.bf16.mxu1 %v1371_v9 }
  0x85   :  { %824 = vmatpush2.bf16.msra.mxu0 %v1366_v10  ;;  %867 = vmatpush2.bf16.msra.mxu1 %v1369_v11  ;;  %v1409_v10 = vld [vmem:[#allocation10 + $0x38] sm:$0xff]  }
  0x86   :  { %825 = vmatprep.subr.bf16.mxu0 %v1374_v12  ;;  %868 = vmatprep.subr.bf16.mxu1 %v1377_v13  ;;  %v1410_v13 = vld [vmem:[#allocation10 + $0x70] sm:$0xff]  }
  0x89   :  { %826 = vmatpush2.bf16.msra.mxu0 %v1372_v14  ;;  %869 = vmatpush2.bf16.msra.mxu1 %v1375_v15  ;;  %v1411_v14 = vld [vmem:[#allocation10 + $0x30] sm:$0xff]   ;;  %v1412_v15 = vld [vmem:[#allocation10 + $0x68] sm:$0xff]  }
  0x8a   :  { %827 = vmatprep.subr.bf16.mxu0 %v1380_v16  ;;  %870 = vmatprep.subr.bf16.mxu1 %v1383_v17  ;;  %v1413_v16 = vld [vmem:[#allocation10 + $0x28] sm:$0xff]   ;;  %v1414_v17 = vld [vmem:[#allocation10 + $0x60] sm:$0xff]  }
  0x8d   :  { %828 = vmatpush2.bf16.msra.mxu0 %v1378_v18  ;;  %871 = vmatpush2.bf16.msra.mxu1 %v1381_v19  ;;  %v1415_v18 = vld [vmem:[#allocation10 + $0x20] sm:$0xff]   ;;  %v1416_v19 = vld [vmem:[#allocation10 + $0x58] sm:$0xff]  }
  0x8e   :  { %829 = vmatprep.subr.bf16.mxu0 %v1386_v20  ;;  %872 = vmatprep.subr.bf16.mxu1 %v1389_v21  ;;  %v1417_v20 = vld [vmem:[#allocation10 + $0x18] sm:$0xff]   ;;  %v1418_v21 = vld [vmem:[#allocation10 + $0x50] sm:$0xff]  }
  0x91   :  { %830 = vmatpush2.bf16.msra.mxu0 %v1384_v22  ;;  %873 = vmatpush2.bf16.msra.mxu1 %v1387_v23  ;;  %v1419_v22 = vld [vmem:[#allocation10 + $0x10] sm:$0xff]   ;;  %v1420_v23 = vld [vmem:[#allocation10 + $0x48] sm:$0xff]  }
  0x92   :  { %831 = vmatprep.subr.bf16.mxu0 %v1392_v24  ;;  %874 = vmatprep.subr.bf16.mxu1 %v1395_v25  ;;  %v1421_v24 = vld [vmem:[#allocation10 + $0x8] sm:$0xff]   ;;  %v1422_v25 = vld [vmem:[#allocation10 + $0x40] sm:$0xff]  }
  0x95   :  { %832 = vmatpush2.bf16.msra.mxu0 %v1390_v26  ;;  %875 = vmatpush2.bf16.msra.mxu1 %v1393_v27  ;;  %v1423_v26 = vld [vmem:[#allocation10] sm:$0xff]   ;;  %v473_v27 = vld [vmem:[%s1662_s4] sm:$0x3] }
  0x96   :  { %833 = vmatprep.subr.bf16.mxu0 %v1398_v28  ;;  %876 = vmatprep.subr.bf16.mxu1 %v1401_v29  ;;  %v482_v28 = vrot.slane %v473_v27, %v137_v39  ;;  %v478_v29 = vrot.slane %v473_v27, %v133_v41 }
  0x99   :  { %834 = vmatpush2.bf16.msra.mxu0 %v1396_v30  ;;  %877 = vmatpush2.bf16.msra.mxu1 %v1399_v31 }
  0x9a   :  { %835 = vmatprep.subr.bf16.mxu0 %v1404_v32  ;;  %878 = vmatprep.subr.bf16.mxu1 %v1407_v33 }
  0x9d   :  { %836 = vmatpush2.bf16.msra.mxu0 %v1402_v34  ;;  %879 = vmatpush2.bf16.msra.mxu1 %v1405_v35 }
  0x9e   :  { %1229 = vmatprep.subr.bf16.mxu0 %v1408_v36 }
 0x120   :  { %v345_v44 = vpop.f32.mrf.mxu0  ;;  %v388_v45 = vpop.f32.mrf.mxu1 }
 0x121   :  { %v346_v58 = vadd.f32 %v345_v44, %v134_v48  ;;  %v389_v59 = vadd.f32 %v388_v45, %v142_v49 }
 0x122   :  { %v347_v50 = vpop.f32.mrf.mxu0  ;;  %v390_v51 = vpop.f32.mrf.mxu1 }
 0x123   :  { %v348_v54 = vadd.f32 %v347_v50, %v138_v46  ;;  %v391_v55 = vadd.f32 %v390_v51, %v146_v47  ;;  %v397_v6 = vmax.f32 %v346_v58, 0.0  ;;  %v399_v7 = vmax.f32 %v389_v59, 0.0 }
 0x124   :  { %v349_v52 = vpop.f32.mrf.mxu0  ;;  %v392_v53 = vpop.f32.mrf.mxu1 }
 0x125   :  { %v350_v56 = vadd.f32 %v349_v52, %v134_v48  ;;  %v393_v57 = vadd.f32 %v392_v53, %v142_v49  ;;  %v398_v2 = vmax.f32 %v348_v54, 0.0  ;;  %v400_v3 = vmax.f32 %v391_v55, 0.0  ;;  %v1212_v54 = vld [vmem:[%s1664_s6] ss:$0 sm:$0xff]  ;;  %s1570_s6 = smov [#allocation11]  }
 0x126   :  { %v351_v60 = vpop.f32.mrf.mxu0  ;;  %v394_v61 = vpop.f32.mrf.mxu1  ;;  %s1102_s30 = sshll.u32 %s1570_s6, 4  ;;  %s1103_s30 = int_to_ptr.vmem [resolvable:$true] %s1102_s30 }
 0x127   :  { %v352_v62 = vadd.f32 %v351_v60, %v138_v46  ;;  %v395_v63 = vadd.f32 %v394_v61, %v146_v47  ;;  %v401_v0 = vmax.f32 %v350_v56, 0.0  ;;  %v403_v1 = vmax.f32 %v393_v57, 0.0  ;;  %s1530_s8 = scalar_lea.vmem %s1103_s30, 256  ;;  %p1535_p12 = scmp.lt.s32.totalorder %s1103_s30, %s1103_s30 }
 0x128   :  { %p1531_p11 = scmp.ne.s32.totalorder %s1103_s30, %s1530_s8  ;;  %p1536_p13 = scmp.lt.s32.totalorder %s1530_s8, %s1530_s8 }
 0x129   :  { %v402_v4 = vmax.f32 %v352_v62, 0.0  ;;  %v404_v5 = vmax.f32 %v395_v63, 0.0  ;;  %v405_v11 = vpack.c.bf16 %v401_v0, %v397_v6  ;;  %v407_v12 = vpack.c.bf16 %v403_v1, %v399_v7 }
 0x12a   :  { %p1537_p0 = por %p1536_p13, %p1535_p12 }
 0x12b   :  { %v406_v8 = vpack.c.bf16 %v402_v4, %v398_v2  ;;  %v408_v9 = vpack.c.bf16 %v404_v5, %v400_v3 }
 0x12c   :  { %p1538_p1 = pnand %p1537_p0, %p1531_p11 }
 0x12d   :  { %837 = vmatprep.mubr.bf16.mxu0 %v406_v8  ;;  %880 = vmatprep.mubr.bf16.mxu1 %v408_v9 }
 0x12e   :  { %838 = vmatmul.mubr.bf16.vlgmr.msra.gmra.mxu0 %v405_v11  ;;  %881 = vmatmul.mubr.bf16.vlgmr.msra.gmra.mxu1 %v407_v12 }
 0x12f   :  { %1230 = vmatpush3.bf16.msra.mxu0 %v1409_v10 }
 0x130   :  { %1231 = vmatprep.subr.bf16.mxu0 %v1410_v13 }
 0x133   :  { %1232 = vmatpush3.bf16.msra.mxu0 %v1411_v14 }
 0x134   :  { %1233 = vmatprep.subr.bf16.mxu0 %v1412_v15 }
 0x137   :  { %1234 = vmatpush3.bf16.msra.mxu0 %v1413_v16 }
 0x138   :  { %1235 = vmatprep.subr.bf16.mxu0 %v1414_v17 }
 0x13b   :  { %1236 = vmatpush3.bf16.msra.mxu0 %v1415_v18 }
 0x13c   :  { %1237 = vmatprep.subr.bf16.mxu0 %v1416_v19 }
 0x13f   :  { %1238 = vmatpush3.bf16.msra.mxu0 %v1417_v20 }
 0x140   :  { %1239 = vmatprep.subr.bf16.mxu0 %v1418_v21 }
 0x143   :  { %1240 = vmatpush3.bf16.msra.mxu0 %v1419_v22 }
 0x144   :  { %1241 = vmatprep.subr.bf16.mxu0 %v1420_v23 }
 0x147   :  { %1242 = vmatpush3.bf16.msra.mxu0 %v1421_v24 }
 0x148   :  { %1243 = vmatprep.subr.bf16.mxu0 %v1422_v25 }
 0x14b   :  { %1244 = vmatpush3.bf16.msra.mxu0 %v1423_v26 }
 0x1ee   :  { %v839_v30 = vpop.f32.mrf.mxu0  ;;  %v882_v31 = vpop.f32.mrf.mxu1 }
 0x1ef   :  { %v840_v35 = vadd.f32 %v839_v30, %v478_v29 }
 0x1f0   :  { %v841_v32 = vpop.f32.mrf.mxu0  ;;  %v884_v33 = vpop.f32.mrf.mxu1 }
 0x1f1   :  { %v842_v34 = vadd.f32 %v841_v32, %v482_v28  ;;  %v883_v46 = vadd.f32 %v882_v31, %v840_v35 }
 0x1f2   :  { %v843_v36 = vpop.f32.mrf.mxu0  ;;  %v886_v37 = vpop.f32.mrf.mxu1 }
 0x1f3   :  { %v844_v40 = vadd.f32 %v843_v36, %v478_v29  ;;  %v885_v43 = vadd.f32 %v884_v33, %v842_v34  ;;  %v891_v41 = vmax.f32 %v883_v46, 0.0 }
 0x1f4   :  { %v845_v42 = vpop.f32.mrf.mxu0  ;;  %v888_v47 = vpop.f32.mrf.mxu1 }
 0x1f5   :  { %v887_v44 = vadd.f32 %v886_v37, %v844_v40  ;;  %v846_v45 = vadd.f32 %v845_v42, %v482_v28  ;;  %v892_v49 = vmax.f32 %v885_v43, 0.0 }
 0x1f7   :  { %v889_v48 = vadd.f32 %v888_v47, %v846_v45  ;;  %v893_v39 = vmax.f32 %v887_v44, 0.0 }
 0x1f9   :  { %v894_v38 = vmax.f32 %v889_v48, 0.0  ;;  %v895_v51 = vpack.c.bf16 %v893_v39, %v891_v41 }
 0x1fb   :  { %v896_v50 = vpack.c.bf16 %v894_v38, %v892_v49 }
 0x1fd   :  { %1064 = vmatprep.mubr.bf16.mxu0 %v896_v50 }
 0x1fe   :  { %1065 = vmatmul.mubr.bf16.vlgmr.msra.gmra.mxu0 %v895_v51 }
 0x2be   :  { %v1245_v52 = vpop.f32.mrf.mxu0 }
 0x2c0   :  { %v1246_v53 = vpop.f32.mrf.mxu0 }
 0x2c1   :  { %v1247_v55 = vadd.f32 %v1246_v53, %v1245_v52 }
 0x2c2   :  { %v1248_v56 = vpop.f32.mrf.mxu0 }
 0x2c3   :  { %v1067_v57 = vadd.f32 %v1247_v55, %v1212_v54 }
 0x2c4   :  { %v1249_v58 = vpop.f32.mrf.mxu0 }
 0x2c5   :  { %v1250_v59 = vadd.f32 %v1249_v58, %v1248_v56  ;;  %1073 = vmax.xlane.f32.xlu0 %v1067_v57 }
 0x2c7   :  { %v1070_v60 = vadd.f32 %v1250_v59, %v1212_v54 }
 0x2c9   :  { %1075 = vmax.xlane.f32.xlu0 %v1070_v60 }
 0x34e   :  { %v1074_v61 = vpop.xlane.xlu0 %1073 }
 0x34f   :  { %v1077_v63 = vsub.f32 %v1067_v57, %v1074_v61 }
 0x352   :  { %v1076_v62 = vpop.xlane.xlu0 %1075 }
 0x353   :  { %v1078_v0 = vsub.f32 %v1070_v60, %v1076_v62 }
 0x355   :  { %v1079_v1 = vpack.c.bf16 %v1078_v0, %v1077_v63 }
 0x357   :  { %v1081_v2 = vmul.bf16 1069105081, %v1079_v1 }
 0x359   :  { %1424 = vpow.bf16 %v1081_v2 }
 0x367   :  { %v1425_v3 = vpop.eup %1424 }
 0x368   :  { %v1083_v4 = vunpack.c.l.bf16 %v1425_v3  ;;  %v1084_v5 = vunpack.c.h.bf16 %v1425_v3 }
 0x36a   :  { %1085 = vadd.xlane.f32.xlu1 %v1083_v4 }
 0x36e   :  { %1087 = vadd.xlane.f32.xlu1 %v1084_v5 }
 0x3f3   :  { %v1086_v6 = vpop.xlane.xlu1 %1085 }
 0x3f4   :  { %1426 = vrcp.f32 %v1086_v6 }
 0x3f7   :  { %v1088_v7 = vpop.xlane.xlu1 %1087 }
 0x3f8   :  { %1428 = vrcp.f32 %v1088_v7 }
 0x401   :  { %v1427_v8 = vpop.eup %1426 }
 0x402   :  { %v1093_v9 = vmul.f32 %v1427_v8, %v1083_v4 }
 0x404   :  { %1095 = vst [vmem:[#allocation11] sm:$0xff] %v1093_v9 }
 0x405   :  { %v1429_v10 = vpop.eup %1428 }
 0x406   :  { %v1094_v11 = vmul.f32 %v1429_v10, %v1084_v5 }
 0x408   :  { %1096 = vst [vmem:[#allocation11 + $0x8] sm:$0xff] %v1094_v11 }
 0x409   :  { %1541 = shalt.err (!%p1538_p1)
}
 0x40a   :  { %1108 = dma.vmem_to_hbm [thread:$0]  %s1103_s30, 256, %s1665_s7, [#allocation4], %s1563_s13, %s1563_s13, %s1564_s14  }
 0x40b   :  { %1556 = dma.done.wait [#allocation4], 256  }
 0x40c   :  { %1557 = vsyncadd [#allocation4], 4294967040 }
 0x40d   :  { %1112 = vsyncpa [#allocation3], 1 }
 0x40e   :  { %1113 = vsyncpa [#allocation6], 1 }
 0x40f   :  { %1114 = vsyncpa [#allocation9], 1 }
 0x410   :  { %1115 = vsyncpa [#allocation4], 1 }

</bundles_post_ra>
